<compile_context>
chip_gen: v7x
topology: tpu7x:2x2x1
jax: 0.10.0
libtpu: 0.0.40
codegen_flags: <defaults>
</compile_context>

<pallas_src>
import functools

import jax
import jax.numpy as jnp
from jax.experimental import pallas as pl
from jax.experimental.pallas import tpu as pltpu

_COL_CANDIDATES = (4096, 2048, 1024, 512, 256, 128)   # lane-dense widths (multiples of 128)
_TARGET_BLOCK_BYTES = 2 * 1024 * 1024                 # ~2 MiB tiles: safe for v5e/v6e/v7x scoped VMEM


def _cdiv(a, b):
    return -(-a // b)


def _drop_path_kernel(seed_ref, x_ref, o_ref, *, threshold24, scale, block_elems, cols):
    # Global linear element index of every element in this block.
    r = jax.lax.broadcasted_iota(jnp.int32, x_ref.shape, 0)
    c = jax.lax.broadcasted_iota(jnp.int32, x_ref.shape, 1)
    idx = pl.program_id(0) * block_elems + r * cols + c

    # Counter-based PRNG: mix in the seed, then murmur3 finalizer (good avalanche).
    # int32 arithmetic wraps; the hash itself runs in uint32 (logical shifts).
    mixed = idx + seed_ref[0] * jnp.int32(-1640531527)          # seed * golden-ratio constant
    h = mixed.astype(jnp.uint32)
    h = h ^ (h >> 16)
    h = h * jnp.uint32(0x85EBCA6B)
    h = h ^ (h >> 13)
    h = h * jnp.uint32(0xC2B2AE35)
    h = h ^ (h >> 16)

    # keep <=> uniform24 > p, done as an integer compare on the top 24 bits
    # (no float conversion, no extra mask multiply).
    keep = (h >> 8).astype(jnp.int32) > threshold24

    xv = x_ref[...]
    o_ref[...] = jnp.where(keep, xv * scale, jnp.zeros_like(xv))


def drop_path(x, p, seed, training=True):
    """Pallas DropPath forward. x: any shape (NCHW here), p: drop probability."""
    assert 0.0 <= p <= 1.0
    if (not training) or p == 0.0:
        return x
    if p == 1.0:
        # TODO(synk): torch would divide by zero here (inf * 0 = nan); we return zeros.
        return jnp.zeros_like(x)

    orig_shape = x.shape
    n = x.size
    itemsize = x.dtype.itemsize

    # Lane-dense 2D layout: wide last dim (large multiple of 128). Prefer a width
    # that divides the element count exactly so no pad/slice copies are needed.
    for cols in _COL_CANDIDATES:
        if n % cols == 0:
            rows = n // cols
            break
    else:
        cols = 512
        rows = _cdiv(n, cols)

    # Block rows: ~2 MiB tiles, a multiple of 8 sublanes (or the full array).
    target_rows = max(8, (_TARGET_BLOCK_BYTES // (cols * itemsize)) // 8 * 8)
    if rows <= target_rows:
        block_rows = rows
    else:
        block_rows = target_rows
        rows = _cdiv(rows, block_rows) * block_rows

    padded_n = rows * cols
    flat = x.reshape(-1)
    if padded_n != n:
        flat = jnp.pad(flat, (0, padded_n - n))
    x2d = flat.reshape(rows, cols)

    seed_arr = jnp.asarray([seed], dtype=jnp.int32)
    kernel = functools.partial(
        _drop_path_kernel,
        threshold24=int(p * (1 << 24)),     # keep iff top-24-bit uniform > p
        scale=1.0 / (1.0 - p),
        block_elems=block_rows * cols,
        cols=cols,
    )

    out2d = pl.pallas_call(
        kernel,
        out_shape=jax.ShapeDtypeStruct((rows, cols), x.dtype),
        grid_spec=pltpu.PrefetchScalarGridSpec(
            num_scalar_prefetch=1,
            grid=(rows // block_rows,),
            in_specs=[pl.BlockSpec((block_rows, cols), lambda i, seed_ref: (i, 0))],
            out_specs=pl.BlockSpec((block_rows, cols), lambda i, seed_ref: (i, 0)),
        ),
        compiler_params=pltpu.CompilerParams(
            # independent blocks -> let v7x shard the grid across both TensorCores
            dimension_semantics=("parallel",),
        ),
    )(seed_arr, x2d)

    if padded_n != n:
        return out2d.reshape(-1)[:n].reshape(orig_shape)
    return out2d.reshape(orig_shape)


if __name__ == "__main__":
    key = jax.random.PRNGKey(0)
    # NCHW input, small shapes: batch=2, channels=4, spatial=16x16
    x = jax.random.normal(key, (2, 4, 16, 16), dtype=jnp.float32)
    p = 0.3

    # training mode: stochastic drop + rescale
    y_train = jax.block_until_ready(drop_path(x, p, seed=0, training=True))
    # eval mode: identity
    y_eval = jax.block_until_ready(drop_path(x, p, seed=0, training=False))

    # sanity checks on semantics
    assert y_train.shape == x.shape and y_train.dtype == x.dtype
    assert bool(jnp.all(y_eval == x))
    # every output element is either 0 (dropped) or x/(1-p) (kept)
    kept = jnp.isclose(y_train, x / (1.0 - p), rtol=1e-5, atol=1e-6)
    dropped = y_train == 0.0
    assert bool(jnp.all(kept | dropped))
    # roughly the right fraction survives (loose statistical bound)
    keep_frac = float(jnp.mean(kept.astype(jnp.float32)))
    assert 0.5 < keep_frac < 0.9, keep_frac

    print("KERNEL_OK")
</pallas_src>

<mosaic_0001>
module attributes {stable_mosaic.version = 11 : i64} {
  func.func @_drop_path_kernel(%arg0: i32, %arg1: memref<1xi32, #tpu.memory_space<smem>>, %arg2: memref<1x2048xf32, #tpu.memory_space<vmem>>, %arg3: memref<1x2048xf32, #tpu.memory_space<vmem>>) attributes {dimension_semantics = [#tpu.dimension_semantics<parallel>], iteration_bounds = array<i64: 1>, scalar_prefetch = 1 : i64, scratch_operands = 0 : i64, tpu.core_type = #tpu.core_type<tc>, window_params = [{transform_indices = @transform_0, window_bounds = array<i64: 1, 2048>}, {transform_indices = @transform_1, window_bounds = array<i64: 1, 2048>}]} {
    %0 = tpu.iota {dimensions = array<i32: 0>} : vector<1x2048xi32>
    %1 = tpu.iota {dimensions = array<i32: 1>} : vector<1x2048xi32>
    %c2048_i32 = arith.constant 2048 : i32
    %2 = arith.muli %arg0, %c2048_i32 : i32
    %c2048_i32_0 = arith.constant 2048 : i32
    %3 = vector.broadcast %c2048_i32_0 : i32 to vector<1x2048xi32>
    %4 = arith.muli %0, %3 : vector<1x2048xi32>
    %5 = vector.broadcast %2 : i32 to vector<1x2048xi32>
    %6 = arith.addi %5, %4 : vector<1x2048xi32>
    %7 = arith.addi %6, %1 : vector<1x2048xi32>
    %c0 = arith.constant 0 : index
    %8 = memref.load %arg1[%c0] : memref<1xi32, #tpu.memory_space<smem>>
    %c-1640531527_i32 = arith.constant -1640531527 : i32
    %9 = arith.muli %8, %c-1640531527_i32 : i32
    %10 = vector.broadcast %9 : i32 to vector<1x2048xi32>
    %11 = arith.addi %7, %10 : vector<1x2048xi32>
    %c16_i32 = arith.constant 16 : i32
    %12 = vector.broadcast %c16_i32 : i32 to vector<1x2048xi32>
    %13 = arith.shrui %11, %12 : vector<1x2048xi32>
    %14 = arith.xori %11, %13 : vector<1x2048xi32>
    %c-2048144789_i32 = arith.constant -2048144789 : i32
    %15 = vector.broadcast %c-2048144789_i32 : i32 to vector<1x2048xi32>
    %16 = arith.muli %14, %15 : vector<1x2048xi32>
    %c13_i32 = arith.constant 13 : i32
    %17 = vector.broadcast %c13_i32 : i32 to vector<1x2048xi32>
    %18 = arith.shrui %16, %17 : vector<1x2048xi32>
    %19 = arith.xori %16, %18 : vector<1x2048xi32>
    %c-1028477387_i32 = arith.constant -1028477387 : i32
    %20 = vector.broadcast %c-1028477387_i32 : i32 to vector<1x2048xi32>
    %21 = arith.muli %19, %20 : vector<1x2048xi32>
    %c16_i32_1 = arith.constant 16 : i32
    %22 = vector.broadcast %c16_i32_1 : i32 to vector<1x2048xi32>
    %23 = arith.shrui %21, %22 : vector<1x2048xi32>
    %24 = arith.xori %21, %23 : vector<1x2048xi32>
    %c8_i32 = arith.constant 8 : i32
    %25 = vector.broadcast %c8_i32 : i32 to vector<1x2048xi32>
    %26 = arith.shrui %24, %25 : vector<1x2048xi32>
    %c5033164_i32 = arith.constant 5033164 : i32
    %27 = vector.broadcast %c5033164_i32 : i32 to vector<1x2048xi32>
    %28 = arith.cmpi sgt, %26, %27 : vector<1x2048xi32>
    %c0_2 = arith.constant 0 : index
    %c0_3 = arith.constant 0 : index
    %29 = vector.load %arg2[%c0_2, %c0_3] : memref<1x2048xf32, #tpu.memory_space<vmem>>, vector<1x2048xf32>
    %cst = arith.constant 1.42857146 : f32
    %30 = vector.broadcast %cst : f32 to vector<1x2048xf32>
    %31 = arith.mulf %29, %30 : vector<1x2048xf32>
    %cst_4 = arith.constant 0.000000e+00 : f32
    %32 = vector.broadcast %cst_4 : f32 to vector<1x2048xf32>
    %33 = arith.select %28, %31, %32 : vector<1x2048xi1>, vector<1x2048xf32>
    %c0_5 = arith.constant 0 : index
    %c0_6 = arith.constant 0 : index
    %34 = vector.load %arg3[%c0_5, %c0_6] : memref<1x2048xf32, #tpu.memory_space<vmem>>, vector<1x2048xf32>
    tpu.vector_store %arg3[%c0_5, %c0_6], %33 {strides = array<i32>} : memref<1x2048xf32, #tpu.memory_space<vmem>>, vector<1x2048xf32>,
    return
  }
  func.func @transform_0(%arg0: i32, %arg1: memref<1xi32, #tpu.memory_space<smem>>) -> (i32, i32) {
    %c0_i32 = arith.constant 0 : i32
    %c0_i32_0 = arith.constant 0 : i32
    return %arg0, %c0_i32 : i32, i32
  }
  func.func @transform_1(%arg0: i32, %arg1: memref<1xi32, #tpu.memory_space<smem>>) -> (i32, i32) {
    %c0_i32 = arith.constant 0 : i32
    %c0_i32_0 = arith.constant 0 : i32
    return %arg0, %c0_i32 : i32, i32
  }
}

</mosaic_0001>

<bundles_post_ra>
// kernel: tpu_custom_call.1
= control target key start
LH: loop header
LB: loop body
LE: loop exit
PB: predicated region body
PF: predicated region fallthrough
CT: control target
= control target key end

     0   :  { %8 = vsyncpa [#allocation5], 0  ;;  %s741_s0 = inlined_call_operand.<no memory space> [shape: s32[1], index: 0, kind: input, shape index: {}]   ;;  %s742_s1 = inlined_call_operand.hbm [shape: f32[1,2048], index: 1, kind: input, shape index: {}]   ;;  %s743_s2 = inlined_call_operand.hbm [shape: f32[1,2048], index: 2, kind: output, shape index: {}]  }
   0x1   :  { %9 = vsyncpa [#allocation6], 0  ;;  %s527_s9 = smov [#allocation4]   ;;  %s479_s13 = scalar_lea.hbm %s742_s1, 256 }
   0x2   :  { %s16_s10 = sshll.u32 %s527_s9, 4  ;;  %p480_p0 = scmp.ne.s32.totalorder %s742_s1, %s479_s13  ;;  %s17_s10 = int_to_ptr.vmem [resolvable:$true] %s16_s10 }
   0x3   :  { %p483_p1 = scmp.lt.u32.totalorder %s479_s13, %s742_s1 }
   0x5   :  { %p485_p2 = pnand %p483_p1, %p480_p0 }
   0x7   :  { %488 = shalt.err (!%p485_p2)
}
   0x8   :  { %s489_s18 = scalar_lea.vmem %s17_s10, 256  ;;  %p494_p4 = scmp.lt.s32.totalorder %s17_s10, %s17_s10 }
   0x9   :  { %p490_p3 = scmp.ne.s32.totalorder %s17_s10, %s489_s18  ;;  %p495_p5 = scmp.lt.s32.totalorder %s489_s18, %s489_s18 }
   0xb   :  { %p496_p6 = por %p495_p5, %p494_p4 }
   0xd   :  { %p497_p7 = pnand %p496_p6, %p490_p3 }
   0xf   :  { %500 = shalt.err (!%p497_p7)
}
  0x10   :  { %19 = dma.hbm_to_vmem [thread:$0]  %s742_s1, 256, %s17_s10, [#allocation5]  }
  0x11   :  { %523 = dma.done.wait [#allocation5], 256  }
  0x12   :  { %524 = vsyncadd [#allocation5], 4294967040  ;;  %v23_v0 = vlaneseq  ;;  %s63_s23 = smul.u32 2654435769, %s741_s0  ;;  %v528_v1 = vmov 1966171168  }
  0x13   :  { %v560_v2 = vunpack.c.l.s4 %v528_v1  ;;  %v241_v23 = vld [vmem:[#allocation4] sm:$0xff]  ;;  %v242_v24 = vld [vmem:[#allocation4 + $0x8] sm:$0xff]  ;;  %s529_s0 = smov [#allocation7]  }
  0x14   :  { %v26_v3 = vand.u32 127, %v23_v0  ;;  %v562_v4 = vshrl.u32 %v23_v0, 7  ;;  %v64_v5 = vstv %s63_s23  ;;  %v566_v25 = vmul.f32 1.4285715, %v241_v23  ;;  %s467_s1 = sshll.u32 %s529_s0, 4  ;;  %s468_s1 = int_to_ptr.vmem [resolvable:$true] %s467_s1 }
  0x15   :  { %v568_v26 = vmul.f32 1.4285715, %v242_v24  ;;  %s501_s24 = scalar_lea.vmem %s468_s1, 256  ;;  %p506_p9 = scmp.lt.s32.totalorder %s468_s1, %s468_s1 }
  0x16   :  { %v27_v7 = vadd.s32 128, %v26_v3  ;;  %v28_v8 = vadd.s32 256, %v26_v3  ;;  %v29_v9 = vadd.s32 384, %v26_v3  ;;  %v30_v10 = vadd.s32 512, %v26_v3  ;;  %p502_p8 = scmp.ne.s32.totalorder %s468_s1, %s501_s24  ;;  %p507_p10 = scmp.lt.s32.totalorder %s501_s24, %s501_s24 }
  0x17   :  { %v31_v11 = vadd.s32 640, %v26_v3  ;;  %v32_v12 = vadd.s32 768, %v26_v3  ;;  %v33_v13 = vadd.s32 896, %v26_v3  ;;  %v34_v14 = vadd.s32 1024, %v26_v3 }
  0x18   :  { %v35_v15 = vadd.s32 1152, %v26_v3  ;;  %v36_v16 = vadd.s32 1280, %v26_v3  ;;  %v37_v17 = vadd.s32 1408, %v26_v3  ;;  %v38_v18 = vadd.s32 1536, %v26_v3  ;;  %p508_p11 = por %p507_p10, %p506_p9 }
  0x19   :  { %v39_v19 = vadd.s32 1664, %v26_v3  ;;  %v40_v20 = vadd.s32 1792, %v26_v3  ;;  %v41_v21 = vadd.s32 1920, %v26_v3  ;;  %v43_v22 = vmul.u32 2048, %v562_v4 }
  0x1a   :  { %v249_v27 = vsub.s32 0, %v562_v4  ;;  %v253_v28 = vsub.s32 1, %v562_v4  ;;  %p509_p12 = pnand %p508_p11, %p502_p8 }
  0x1b   :  { %v46_v29 = vadd.s32 %v43_v22, %v26_v3  ;;  %v47_v30 = vadd.s32 %v43_v22, %v27_v7  ;;  %v48_v31 = vadd.s32 %v43_v22, %v28_v8  ;;  %v49_v32 = vadd.s32 %v43_v22, %v29_v9 }
  0x1c   :  { %v50_v33 = vadd.s32 %v43_v22, %v30_v10  ;;  %v51_v34 = vadd.s32 %v43_v22, %v31_v11  ;;  %v52_v35 = vadd.s32 %v43_v22, %v32_v12  ;;  %v53_v36 = vadd.s32 %v43_v22, %v33_v13 }
  0x1d   :  { %v54_v37 = vadd.s32 %v43_v22, %v34_v14  ;;  %v55_v38 = vadd.s32 %v43_v22, %v35_v15  ;;  %v56_v39 = vadd.s32 %v43_v22, %v36_v16  ;;  %v57_v40 = vadd.s32 %v43_v22, %v37_v17 }
  0x1e   :  { %v58_v41 = vadd.s32 %v43_v22, %v38_v18  ;;  %v59_v42 = vadd.s32 %v43_v22, %v39_v19  ;;  %v60_v43 = vadd.s32 %v43_v22, %v40_v20  ;;  %v61_v44 = vadd.s32 %v43_v22, %v41_v21 }
  0x1f   :  { %v65_v45 = vadd.s32 %v64_v5, %v46_v29  ;;  %v66_v46 = vadd.s32 %v64_v5, %v47_v30  ;;  %v67_v47 = vadd.s32 %v64_v5, %v48_v31  ;;  %v68_v48 = vadd.s32 %v64_v5, %v49_v32 }
  0x20   :  { %v69_v49 = vadd.s32 %v64_v5, %v50_v33  ;;  %v70_v50 = vadd.s32 %v64_v5, %v51_v34  ;;  %v71_v51 = vadd.s32 %v64_v5, %v52_v35  ;;  %v72_v52 = vadd.s32 %v64_v5, %v53_v36 }
  0x21   :  { %v73_v53 = vadd.s32 %v64_v5, %v54_v37  ;;  %v74_v54 = vadd.s32 %v64_v5, %v55_v38  ;;  %v75_v55 = vadd.s32 %v64_v5, %v56_v39  ;;  %v76_v56 = vadd.s32 %v64_v5, %v57_v40 }
  0x22   :  { %v77_v57 = vadd.s32 %v64_v5, %v58_v41  ;;  %v78_v58 = vadd.s32 %v64_v5, %v59_v42  ;;  %v79_v59 = vadd.s32 %v64_v5, %v60_v43  ;;  %v80_v60 = vadd.s32 %v64_v5, %v61_v44 }
  0x23   :  { %v81_v61 = vshrl.u32 %v65_v45, 16  ;;  %v82_v62 = vshrl.u32 %v66_v46, 16  ;;  %v83_v63 = vshrl.u32 %v67_v47, 16  ;;  %v84_v0 = vshrl.u32 %v68_v48, 16 }
  0x24   :  { %v85_v1 = vshrl.u32 %v69_v49, 16  ;;  %v86_v3 = vshrl.u32 %v70_v50, 16  ;;  %v87_v7 = vshrl.u32 %v71_v51, 16  ;;  %v88_v8 = vshrl.u32 %v72_v52, 16 }
  0x25   :  { %v89_v9 = vshrl.u32 %v73_v53, 16  ;;  %v90_v10 = vshrl.u32 %v74_v54, 16  ;;  %v91_v11 = vshrl.u32 %v75_v55, 16  ;;  %v92_v12 = vshrl.u32 %v76_v56, 16 }
  0x26   :  { %v93_v13 = vshrl.u32 %v77_v57, 16  ;;  %v94_v14 = vshrl.u32 %v78_v58, 16  ;;  %v95_v15 = vshrl.u32 %v79_v59, 16  ;;  %v96_v16 = vshrl.u32 %v80_v60, 16 }
  0x27   :  { %v97_v17 = vxor.u32 %v81_v61, %v65_v45  ;;  %v98_v18 = vxor.u32 %v82_v62, %v66_v46  ;;  %v99_v19 = vxor.u32 %v83_v63, %v67_v47  ;;  %v100_v5 = vxor.u32 %v84_v0, %v68_v48 }
  0x28   :  { %v101_v20 = vxor.u32 %v85_v1, %v69_v49  ;;  %v102_v21 = vxor.u32 %v86_v3, %v70_v50  ;;  %v103_v22 = vxor.u32 %v87_v7, %v71_v51  ;;  %v104_v23 = vxor.u32 %v88_v8, %v72_v52 }
  0x29   :  { %v105_v24 = vxor.u32 %v89_v9, %v73_v53  ;;  %v106_v29 = vxor.u32 %v90_v10, %v74_v54  ;;  %v107_v30 = vxor.u32 %v91_v11, %v75_v55  ;;  %v108_v31 = vxor.u32 %v92_v12, %v76_v56 }
  0x2a   :  { %v109_v32 = vxor.u32 %v93_v13, %v77_v57  ;;  %v110_v33 = vxor.u32 %v94_v14, %v78_v58  ;;  %v111_v34 = vxor.u32 %v95_v15, %v79_v59  ;;  %v112_v35 = vxor.u32 %v96_v16, %v80_v60 }
  0x2b   :  { %v113_v36 = vmul.u32 2246822507, %v97_v17  ;;  %v114_v37 = vmul.u32 2246822507, %v98_v18  ;;  %v575_v38 = vrot.slane %v566_v25, %v249_v27  ;;  %v580_v39 = vrot.slane %v566_v25, %v253_v28 }
  0x2c   :  { %v115_v40 = vmul.u32 2246822507, %v99_v19  ;;  %v116_v41 = vmul.u32 2246822507, %v100_v5  ;;  %v257_v42 = vsub.s32 2, %v562_v4  ;;  %v261_v43 = vsub.s32 3, %v562_v4 }
  0x2d   :  { %v117_v44 = vmul.u32 2246822507, %v101_v20  ;;  %v118_v45 = vmul.u32 2246822507, %v102_v21  ;;  %v129_v46 = vshrl.u32 %v113_v36, 13  ;;  %v130_v47 = vshrl.u32 %v114_v37, 13 }
  0x2e   :  { %v119_v48 = vmul.u32 2246822507, %v103_v22  ;;  %v120_v49 = vmul.u32 2246822507, %v104_v23  ;;  %v131_v50 = vshrl.u32 %v115_v40, 13  ;;  %v132_v51 = vshrl.u32 %v116_v41, 13 }
  0x2f   :  { %v121_v52 = vmul.u32 2246822507, %v105_v24  ;;  %v122_v53 = vmul.u32 2246822507, %v106_v29  ;;  %v133_v54 = vshrl.u32 %v117_v44, 13  ;;  %v134_v55 = vshrl.u32 %v118_v45, 13 }
  0x30   :  { %v123_v56 = vmul.u32 2246822507, %v107_v30  ;;  %v124_v57 = vmul.u32 2246822507, %v108_v31  ;;  %v135_v58 = vshrl.u32 %v119_v48, 13  ;;  %v136_v59 = vshrl.u32 %v120_v49, 13 }
  0x31   :  { %v125_v60 = vmul.u32 2246822507, %v109_v32  ;;  %v126_v61 = vmul.u32 2246822507, %v110_v33  ;;  %v137_v62 = vshrl.u32 %v121_v52, 13  ;;  %v138_v63 = vshrl.u32 %v122_v53, 13 }
  0x32   :  { %v127_v0 = vmul.u32 2246822507, %v111_v34  ;;  %v128_v1 = vmul.u32 2246822507, %v112_v35  ;;  %v139_v3 = vshrl.u32 %v123_v56, 13  ;;  %v140_v7 = vshrl.u32 %v124_v57, 13 }
  0x33   :  { %v141_v8 = vshrl.u32 %v125_v60, 13  ;;  %v142_v9 = vshrl.u32 %v126_v61, 13  ;;  %v145_v10 = vxor.u32 %v129_v46, %v113_v36  ;;  %v146_v11 = vxor.u32 %v130_v47, %v114_v37 }
  0x34   :  { %v143_v12 = vshrl.u32 %v127_v0, 13  ;;  %v144_v13 = vshrl.u32 %v128_v1, 13  ;;  %v147_v14 = vxor.u32 %v131_v50, %v115_v40  ;;  %v148_v15 = vxor.u32 %v132_v51, %v116_v41 }
  0x35   :  { %v149_v16 = vxor.u32 %v133_v54, %v117_v44  ;;  %v150_v17 = vxor.u32 %v134_v55, %v118_v45  ;;  %v151_v18 = vxor.u32 %v135_v58, %v119_v48  ;;  %v152_v19 = vxor.u32 %v136_v59, %v120_v49 }
  0x36   :  { %v153_v5 = vxor.u32 %v137_v62, %v121_v52  ;;  %v154_v20 = vxor.u32 %v138_v63, %v122_v53  ;;  %v155_v21 = vxor.u32 %v139_v3, %v123_v56  ;;  %v156_v22 = vxor.u32 %v140_v7, %v124_v57 }
  0x37   :  { %v157_v23 = vxor.u32 %v141_v8, %v125_v60  ;;  %v158_v24 = vxor.u32 %v142_v9, %v126_v61  ;;  %v159_v29 = vxor.u32 %v143_v12, %v127_v0  ;;  %v160_v30 = vxor.u32 %v144_v13, %v128_v1 }
  0x38   :  { %v161_v31 = vmul.u32 3266489909, %v145_v10  ;;  %v162_v32 = vmul.u32 3266489909, %v146_v11  ;;  %v587_v33 = vrot.slane %v566_v25, %v257_v42  ;;  %v592_v34 = vrot.slane %v566_v25, %v261_v43 }
  0x39   :  { %v163_v35 = vmul.u32 3266489909, %v147_v14  ;;  %v164_v36 = vmul.u32 3266489909, %v148_v15  ;;  %v265_v37 = vsub.s32 4, %v562_v4  ;;  %v269_v40 = vsub.s32 5, %v562_v4 }
  0x3a   :  { %v165_v41 = vmul.u32 3266489909, %v149_v16  ;;  %v166_v44 = vmul.u32 3266489909, %v150_v17  ;;  %v177_v45 = vshrl.u32 %v161_v31, 16  ;;  %v178_v46 = vshrl.u32 %v162_v32, 16 }
  0x3b   :  { %v167_v47 = vmul.u32 3266489909, %v151_v18  ;;  %v168_v48 = vmul.u32 3266489909, %v152_v19  ;;  %v179_v49 = vshrl.u32 %v163_v35, 16  ;;  %v180_v50 = vshrl.u32 %v164_v36, 16 }
  0x3c   :  { %v169_v51 = vmul.u32 3266489909, %v153_v5  ;;  %v170_v52 = vmul.u32 3266489909, %v154_v20  ;;  %v181_v53 = vshrl.u32 %v165_v41, 16  ;;  %v182_v54 = vshrl.u32 %v166_v44, 16 }
  0x3d   :  { %v171_v55 = vmul.u32 3266489909, %v155_v21  ;;  %v172_v56 = vmul.u32 3266489909, %v156_v22  ;;  %v183_v57 = vshrl.u32 %v167_v47, 16  ;;  %v184_v58 = vshrl.u32 %v168_v48, 16 }
  0x3e   :  { %v173_v59 = vmul.u32 3266489909, %v157_v23  ;;  %v174_v60 = vmul.u32 3266489909, %v158_v24  ;;  %v185_v61 = vshrl.u32 %v169_v51, 16  ;;  %v186_v62 = vshrl.u32 %v170_v52, 16 }
  0x3f   :  { %v175_v63 = vmul.u32 3266489909, %v159_v29  ;;  %v176_v0 = vmul.u32 3266489909, %v160_v30  ;;  %v187_v1 = vshrl.u32 %v171_v55, 16  ;;  %v188_v3 = vshrl.u32 %v172_v56, 16 }
  0x40   :  { %v189_v7 = vshrl.u32 %v173_v59, 16  ;;  %v190_v8 = vshrl.u32 %v174_v60, 16  ;;  %v193_v9 = vxor.u32 %v177_v45, %v161_v31  ;;  %v194_v10 = vxor.u32 %v178_v46, %v162_v32 }
  0x41   :  { %v191_v11 = vshrl.u32 %v175_v63, 16  ;;  %v192_v12 = vshrl.u32 %v176_v0, 16  ;;  %v195_v13 = vxor.u32 %v179_v49, %v163_v35  ;;  %v196_v14 = vxor.u32 %v180_v50, %v164_v36 }
  0x42   :  { %v197_v15 = vxor.u32 %v181_v53, %v165_v41  ;;  %v198_v16 = vxor.u32 %v182_v54, %v166_v44  ;;  %v199_v17 = vxor.u32 %v183_v57, %v167_v47  ;;  %v200_v18 = vxor.u32 %v184_v58, %v168_v48 }
  0x43   :  { %v201_v19 = vxor.u32 %v185_v61, %v169_v51  ;;  %v202_v5 = vxor.u32 %v186_v62, %v170_v52  ;;  %v203_v20 = vxor.u32 %v187_v1, %v171_v55  ;;  %v204_v21 = vxor.u32 %v188_v3, %v172_v56 }
  0x44   :  { %v205_v22 = vxor.u32 %v189_v7, %v173_v59  ;;  %v206_v23 = vxor.u32 %v190_v8, %v174_v60  ;;  %v207_v24 = vxor.u32 %v191_v11, %v175_v63  ;;  %v208_v29 = vxor.u32 %v192_v12, %v176_v0 }
  0x45   :  { %v209_v30 = vshrl.u32 %v193_v9, 8  ;;  %v210_v6 = vshrl.u32 %v194_v10, 8  ;;  %v211_v31 = vshrl.u32 %v195_v13, 8  ;;  %v212_v32 = vshrl.u32 %v196_v14, 8 }
  0x46   :  { %v213_v45 = vshrl.u32 %v197_v15, 8  ;;  %v214_v46 = vshrl.u32 %v198_v16, 8  ;;  %v215_v35 = vshrl.u32 %v199_v17, 8  ;;  %v216_v36 = vshrl.u32 %v200_v18, 8 }
  0x47   :  { %v217_v41 = vshrl.u32 %v201_v19, 8  ;;  %v218_v44 = vshrl.u32 %v202_v5, 8  ;;  %v219_v47 = vshrl.u32 %v203_v20, 8  ;;  %v220_v48 = vshrl.u32 %v204_v21, 8 }
  0x48   :  { %v221_v49 = vshrl.u32 %v205_v22, 8  ;;  %v222_v50 = vshrl.u32 %v206_v23, 8  ;;  %v223_v51 = vshrl.u32 %v207_v24, 8  ;;  %v224_v52 = vshrl.u32 %v208_v29, 8 }
  0x49   :  { %vm596_vm0 = vcmp.gt.s32.totalorder %v209_v30, 5033164  ;;  %vm600_vm1 = vcmp.gt.s32.totalorder %v210_v6, 5033164  ;;  %vm604_vm2 = vcmp.gt.s32.totalorder %v211_v31, 5033164  ;;  %v266_v56 = vrot.slane %v566_v25, %v265_v37 }
  0x4a   :  { %vm611_vm3 = vcmp.gt.s32.totalorder %v212_v32, 5033164  ;;  %vm615_vm4 = vcmp.gt.s32.totalorder %v213_v45, 5033164  ;;  %vm619_vm5 = vcmp.gt.s32.totalorder %v214_v46, 5033164  ;;  %v270_v59 = vrot.slane %v566_v25, %v269_v40 }
  0x4b   :  { %vm626_vm6 = vcmp.gt.s32.totalorder %v215_v35, 5033164  ;;  %vm630_vm7 = vcmp.gt.s32.totalorder %v216_v36, 5033164  ;;  %vm634_vm8 = vcmp.gt.s32.totalorder %v217_v41, 5033164  ;;  %v282_v63 = vrot.slane %v568_v26, %v249_v27 }
  0x4c   :  { %vm641_vm9 = vcmp.gt.s32.totalorder %v218_v44, 5033164  ;;  %vm645_vm10 = vcmp.gt.s32.totalorder %v219_v47, 5033164  ;;  %vm649_vm11 = vcmp.gt.s32.totalorder %v220_v48, 5033164  ;;  %v286_v7 = vrot.slane %v568_v26, %v253_v28 }
  0x4d   :  { %vm656_vm12 = vcmp.gt.s32.totalorder %v221_v49, 5033164  ;;  %vm660_vm13 = vcmp.gt.s32.totalorder %v222_v50, 5033164  ;;  %vm664_vm14 = vcmp.gt.s32.totalorder %v223_v51, 5033164  ;;  %v290_v10 = vrot.slane %v568_v26, %v257_v42 }
  0x4e   :  { %vm671_vm15 = vcmp.gt.s32.totalorder %v224_v52, 5033164  ;;  %v273_v28 = vsub.s32 6, %v562_v4  ;;  %v277_v12 = vsub.s32 7, %v562_v4  ;;  %v294_v13 = vrot.slane %v568_v26, %v261_v43 }
  0x4f   :  { %v298_v14 = vrot.slane %v568_v26, %v265_v37  ;;  %v302_v42 = vrot.slane %v568_v26, %v269_v40  ;;  %v327_v15 = vsel %vm596_vm0, %v575_v38, 0.0  ;;  %v328_v16 = vsel %vm600_vm1, %v580_v39, 0.0 }
  0x50   :  { %v274_v17 = vrot.slane %v566_v25, %v273_v28  ;;  %v278_v43 = vrot.slane %v566_v25, %v277_v12  ;;  %v306_v18 = vrot.slane %v568_v26, %v273_v28  ;;  %v310_v37 = vrot.slane %v568_v26, %v277_v12 }
  0x51   :  { %v329_v40 = vsel %vm604_vm2, %v587_v33, 0.0  ;;  %v330_v38 = vsel %vm611_vm3, %v592_v34, 0.0  ;;  %v331_v19 = vsel %vm615_vm4, %v266_v56, 0.0  ;;  %v332_v39 = vsel %vm619_vm5, %v270_v59, 0.0 }
  0x52   :  { %v333_v25 = vsel %vm626_vm6, %v274_v17, 0.0  ;;  %v334_v26 = vsel %vm630_vm7, %v278_v43, 0.0  ;;  %v335_v5 = vsel %vm634_vm8, %v282_v63, 0.0  ;;  %v336_v33 = vsel %vm641_vm9, %v286_v7, 0.0 }
  0x53   :  { %v337_v34 = vsel %vm645_vm10, %v290_v10, 0.0  ;;  %v338_v20 = vsel %vm649_vm11, %v294_v13, 0.0  ;;  %v339_v21 = vsel %vm656_vm12, %v298_v14, 0.0  ;;  %v340_v22 = vsel %vm660_vm13, %v302_v42, 0.0 }
  0x54   :  { %v341_v23 = vsel %vm664_vm14, %v306_v18, 0.0  ;;  %v342_v24 = vsel %vm671_vm15, %v310_v37, 0.0  ;;  %v359_v29 = vcombine.low %v327_v15, %v328_v16  ;;  %v360_v30 = vcombine.low %v329_v40, %v330_v38 }
  0x55   :  { %v361_v31 = vcombine.low %v331_v19, %v332_v39  ;;  %v362_v32 = vcombine.low %v333_v25, %v334_v26  ;;  %v776_v45 = vunpack.c.0.s8 %v560_v2  ;;  %v408_v35 = vcombine.low %v335_v5, %v336_v33 }
  0x56   :  { %v409_v36 = vcombine.low %v337_v34, %v338_v20  ;;  %v410_v41 = vcombine.low %v339_v21, %v340_v22  ;;  %v411_v44 = vcombine.low %v341_v23, %v342_v24 }
  0x57   :  { %v368_v46 = vsub.s32 %v776_v45, %v562_v4 }
  0x59   :  { %v369_v47 = vrot.slane %v359_v29, %v368_v46  ;;  %v376_v48 = vrot.slane %v360_v30, %v368_v46  ;;  %v383_v49 = vrot.slane %v361_v31, %v368_v46  ;;  %v390_v50 = vrot.slane %v362_v32, %v368_v46 }
  0x5a   :  { %v418_v51 = vrot.slane %v408_v35, %v368_v46  ;;  %v425_v52 = vrot.slane %v409_v36, %v368_v46  ;;  %v432_v53 = vrot.slane %v410_v41, %v368_v46  ;;  %v439_v54 = vrot.slane %v411_v44, %v368_v46 }
  0x5b   :  { %v391_v55 = vcombine.low %v369_v47, %v376_v48  ;;  %v392_v56 = vcombine.low %v383_v49, %v390_v50 }
  0x5c   :  { %v440_v57 = vcombine.low %v418_v51, %v425_v52  ;;  %v441_v58 = vcombine.low %v432_v53, %v439_v54 }
  0x5d   :  { %v399_v6 = vrot.slane %v391_v55, %v368_v46  ;;  %v406_v59 = vrot.slane %v392_v56, %v368_v46 }
  0x5e   :  { %v448_v2 = vrot.slane %v440_v57, %v368_v46  ;;  %v455_v4 = vrot.slane %v441_v58, %v368_v46 }
  0x5f   :  { %v407_v60 = vcombine.low %v399_v6, %v406_v59 }
  0x60   :  { %v456_v61 = vcombine.low %v448_v2, %v455_v4 }
  0x61   :  { %459 = vst [vmem:[#allocation7] sm:$0xff] %v407_v60 }
  0x62   :  { %460 = vst [vmem:[#allocation7 + $0x8] sm:$0xff] %v456_v61 }
  0x63   :  { %512 = shalt.err (!%p509_p12)
}
  0x64   :  { %s513_s27 = scalar_lea.hbm %s743_s2, 256 }
  0x65   :  { %p514_p13 = scmp.ne.s32.totalorder %s743_s2, %s513_s27  ;;  %p517_p0 = scmp.lt.u32.totalorder %s513_s27, %s743_s2 }
  0x67   :  { %p519_p1 = pnand %p517_p0, %p514_p13 }
  0x69   :  { %522 = shalt.err (!%p519_p1)
}
  0x6a   :  { %470 = dma.vmem_to_hbm [thread:$0]  %s468_s1, 256, %s743_s2, [#allocation6]  }
  0x6b   :  { %525 = dma.done.wait [#allocation6], 256  }
  0x6c   :  { %526 = vsyncadd [#allocation6], 4294967040 }
  0x6d   :  { %474 = vsyncpa [#allocation5], 1 }
  0x6e   :  { %475 = vsyncpa [#allocation6], 1 }

</bundles_post_ra>
